<compile_context>
chip_gen: v7x
topology: tpu7x:2x2x1
jax: 0.10.0
libtpu: 0.0.40
codegen_flags: <defaults>
</compile_context>

<pallas_src>
import jax
import jax.numpy as jnp
from jax.experimental import pallas as pl
from jax.experimental.pallas import tpu as pltpu

LANE = 128


def _round_up(x, m):
    return ((x + m - 1) // m) * m


def _qnet_kernel(x_ref, w1_ref, b1_ref, w2_ref, b2_ref,
                 w3_ref, b3_ref, w4_ref, b4_ref, o_ref):
    # x and weights arrive as bf16 (MXU-native); each matmul accumulates in
    # f32, bias-add + ReLU happen in f32, and the activation is re-cast to
    # bf16 only to feed the next MXU op.
    x = x_ref[...]

    h1 = jnp.dot(x, w1_ref[...], preferred_element_type=jnp.float32) + b1_ref[...]
    h1 = jnp.maximum(h1, 0.0).astype(jnp.bfloat16)

    h2 = jnp.dot(h1, w2_ref[...], preferred_element_type=jnp.float32) + b2_ref[...]
    h2 = jnp.maximum(h2, 0.0).astype(jnp.bfloat16)

    h3 = jnp.dot(h2, w3_ref[...], preferred_element_type=jnp.float32) + b3_ref[...]
    h3 = jnp.maximum(h3, 0.0).astype(jnp.bfloat16)

    out = jnp.dot(h3, w4_ref[...], preferred_element_type=jnp.float32) + b4_ref[...]
    o_ref[...] = out.astype(o_ref.dtype)


def qnetwork_large_forward(x, params, *, tm=2048):
    """x: (B, obs_size) f32.  params: w1..w4 (in,out) f32 and b1..b4 (1,out) f32."""
    B, obs_size = x.shape
    n_actions = params["w4"].shape[1]

    f32, bf16 = jnp.float32, jnp.bfloat16

    # Layer-3 hidden width (64) padded to a full lane width only for the
    # VMEM-resident weights; zero pads reproduce the unpadded math exactly.
    h3_p = _round_up(64, LANE)                     # 64 -> 128

    # ---- batch tiling ----
    tm = _round_up(max(int(tm), 8), 8)             # user tm must be 8-aligned
    n_tiles = pl.cdiv(B, tm)
    if B >= 16:
        # >= 2 tiles so both v7x TensorCores get work via the "parallel" axis;
        # negligible cost (one extra grid step) on single-TC v5e/v6e.
        n_tiles = max(n_tiles, 2)
    TM = _round_up(pl.cdiv(B, n_tiles), 8)         # even split: pad <= 7 rows
    Bp = _round_up(B, TM)

    # ---- wrapper-side padding / casting ----
    # x stays UNPADDED in the feature dim (small K is handled in VMEM/MXU).
    xp = jnp.pad(x, ((0, Bp - B), (0, 0))).astype(bf16)

    w1 = params["w1"].astype(bf16)                                      # (obs, 256)
    b1 = params["b1"].reshape(1, -1).astype(f32)

    w2 = params["w2"].astype(bf16)                                      # (256, 128)
    b2 = params["b2"].reshape(1, -1).astype(f32)

    w3 = jnp.pad(params["w3"], ((0, 0), (0, h3_p - 64))).astype(bf16)   # (128, 128)
    b3 = jnp.pad(params["b3"].reshape(1, -1), ((0, 0), (0, h3_p - 64))).astype(f32)

    w4 = jnp.pad(params["w4"], ((0, h3_p - 64), (0, 0))).astype(bf16)   # (128, n_act)
    b4 = params["b4"].reshape(1, -1).astype(f32)

    weight_ops = (w1, b1, w2, b2, w3, b3, w4, b4)

    def _resident(arr):
        # Same block for every batch tile -> DMA'd once, resident in VMEM.
        return pl.BlockSpec(arr.shape, lambda i: (0, 0))

    out = pl.pallas_call(
        _qnet_kernel,
        # Unpadded bf16 output: HBM writeback is (TM, n_actions) bf16 instead
        # of a padded (TM, 128) f32 slab; upcast + slice below.
        out_shape=jax.ShapeDtypeStruct((Bp, n_actions), bf16),
        grid=(Bp // TM,),
        in_specs=[pl.BlockSpec((TM, obs_size), lambda i: (i, 0))]
                 + [_resident(w) for w in weight_ops],
        out_specs=pl.BlockSpec((TM, n_actions), lambda i: (i, 0)),
        compiler_params=pltpu.CompilerParams(
            dimension_semantics=("parallel",),   # megacore split on v7x
            vmem_limit_bytes=32 << 20,           # covers v5e's 16 MiB default
        ),
    )(xp, *weight_ops)

    return out[:B].astype(f32)


def init_params(key, obs_size, n_actions):
    """Deterministic synthetic init (uniform, PyTorch-Linear-style scale)."""
    sizes = [(obs_size, 256), (256, 128), (128, 64), (64, n_actions)]
    params = {}
    for i, (fan_in, fan_out) in enumerate(sizes, start=1):
        key, kw, kb = jax.random.split(key, 3)
        bound = 1.0 / jnp.sqrt(jnp.float32(fan_in))
        params[f"w{i}"] = jax.random.uniform(
            kw, (fan_in, fan_out), jnp.float32, minval=-bound, maxval=bound)
        params[f"b{i}"] = jax.random.uniform(
            kb, (1, fan_out), jnp.float32, minval=-bound, maxval=bound)
    return params


def reference_forward(x, params):
    h = x
    for i in range(1, 4):
        h = jnp.maximum(h @ params[f"w{i}"] + params[f"b{i}"], 0.0)
    return h @ params["w4"] + params["b4"]


if __name__ == "__main__":
    key = jax.random.PRNGKey(0)
    obs_size, n_actions, batch = 8, 4, 8

    key, kx = jax.random.split(key)
    x = jax.random.normal(kx, (batch, obs_size), jnp.float32)
    params = init_params(key, obs_size, n_actions)

    out = jax.jit(qnetwork_large_forward)(x, params)
    out = jax.block_until_ready(out)

    ref = reference_forward(x, params)
    assert out.shape == (batch, n_actions)
    # bf16 matmul path + bf16 output store vs. f32 reference: tolerance sized
    # for bf16 rounding through 4 layers.
    err = float(jnp.max(jnp.abs(out - ref)))
    assert jnp.allclose(out, ref, atol=5e-2, rtol=5e-2), f"max abs err {err}"

    print("KERNEL_OK")
</pallas_src>

<mosaic_0001>
module attributes {stable_mosaic.version = 11 : i64} {
  func.func @_qnet_kernel(%arg0: i32, %arg1: memref<8x8xbf16, #tpu.memory_space<vmem>>, %arg2: memref<8x256xbf16, #tpu.memory_space<vmem>>, %arg3: memref<1x256xf32, #tpu.memory_space<vmem>>, %arg4: memref<256x128xbf16, #tpu.memory_space<vmem>>, %arg5: memref<1x128xf32, #tpu.memory_space<vmem>>, %arg6: memref<128x128xbf16, #tpu.memory_space<vmem>>, %arg7: memref<1x128xf32, #tpu.memory_space<vmem>>, %arg8: memref<128x4xbf16, #tpu.memory_space<vmem>>, %arg9: memref<1x4xf32, #tpu.memory_space<vmem>>, %arg10: memref<8x4xbf16, #tpu.memory_space<vmem>>) attributes {dimension_semantics = [#tpu.dimension_semantics<parallel>], iteration_bounds = array<i64: 1>, scalar_prefetch = 0 : i64, scratch_operands = 0 : i64, tpu.core_type = #tpu.core_type<tc>, window_params = [{transform_indices = @transform_0, window_bounds = array<i64: 8, 8>}, {pipeline_mode = #tpu.pipeline_mode<synchronous>, transform_indices = @transform_1, window_bounds = array<i64: 8, 256>}, {pipeline_mode = #tpu.pipeline_mode<synchronous>, transform_indices = @transform_2, window_bounds = array<i64: 1, 256>}, {pipeline_mode = #tpu.pipeline_mode<synchronous>, transform_indices = @transform_3, window_bounds = array<i64: 256, 128>}, {pipeline_mode = #tpu.pipeline_mode<synchronous>, transform_indices = @transform_4, window_bounds = array<i64: 1, 128>}, {pipeline_mode = #tpu.pipeline_mode<synchronous>, transform_indices = @transform_5, window_bounds = array<i64: 128, 128>}, {pipeline_mode = #tpu.pipeline_mode<synchronous>, transform_indices = @transform_6, window_bounds = array<i64: 1, 128>}, {pipeline_mode = #tpu.pipeline_mode<synchronous>, transform_indices = @transform_7, window_bounds = array<i64: 128, 4>}, {pipeline_mode = #tpu.pipeline_mode<synchronous>, transform_indices = @transform_8, window_bounds = array<i64: 1, 4>}, {transform_indices = @transform_9, window_bounds = array<i64: 8, 4>}]} {
    %c0 = arith.constant 0 : index
    %c0_0 = arith.constant 0 : index
    %0 = vector.load %arg1[%c0, %c0_0] : memref<8x8xbf16, #tpu.memory_space<vmem>>, vector<8x8xbf16>
    %c0_1 = arith.constant 0 : index
    %c0_2 = arith.constant 0 : index
    %1 = vector.load %arg2[%c0_1, %c0_2] : memref<8x256xbf16, #tpu.memory_space<vmem>>, vector<8x256xbf16>
    %cst = arith.constant dense<0.000000e+00> : vector<8x256xf32>
    %2 = tpu.matmul %0, %1, %cst {dimension_numbers = #tpu.dot_dimension_numbers<[1], [0], [0], [1], [0, 0, 1, 1], [], []>} : vector<8x8xbf16>, vector<8x256xbf16>, vector<8x256xf32> -> vector<8x256xf32>
    %c0_3 = arith.constant 0 : index
    %c0_4 = arith.constant 0 : index
    %3 = vector.load %arg3[%c0_3, %c0_4] : memref<1x256xf32, #tpu.memory_space<vmem>>, vector<1x256xf32>
    %4 = vector.broadcast %3 : vector<1x256xf32> to vector<8x256xf32>
    %5 = arith.addf %2, %4 : vector<8x256xf32>
    %cst_5 = arith.constant 0.000000e+00 : f32
    %6 = vector.broadcast %cst_5 : f32 to vector<8x256xf32>
    %7 = arith.maximumf %5, %6 : vector<8x256xf32>
    %8 = arith.truncf %7 : vector<8x256xf32> to vector<8x256xbf16>
    %c0_6 = arith.constant 0 : index
    %c0_7 = arith.constant 0 : index
    %9 = vector.load %arg4[%c0_6, %c0_7] : memref<256x128xbf16, #tpu.memory_space<vmem>>, vector<256x128xbf16>
    %cst_8 = arith.constant dense<0.000000e+00> : vector<8x128xf32>
    %10 = tpu.matmul %8, %9, %cst_8 {dimension_numbers = #tpu.dot_dimension_numbers<[1], [0], [0], [1], [0, 0, 1, 1], [], []>} : vector<8x256xbf16>, vector<256x128xbf16>, vector<8x128xf32> -> vector<8x128xf32>
    %c0_9 = arith.constant 0 : index
    %c0_10 = arith.constant 0 : index
    %11 = vector.load %arg5[%c0_9, %c0_10] : memref<1x128xf32, #tpu.memory_space<vmem>>, vector<1x128xf32>
    %12 = vector.broadcast %11 : vector<1x128xf32> to vector<8x128xf32>
    %13 = arith.addf %10, %12 : vector<8x128xf32>
    %cst_11 = arith.constant 0.000000e+00 : f32
    %14 = vector.broadcast %cst_11 : f32 to vector<8x128xf32>
    %15 = arith.maximumf %13, %14 : vector<8x128xf32>
    %16 = arith.truncf %15 : vector<8x128xf32> to vector<8x128xbf16>
    %c0_12 = arith.constant 0 : index
    %c0_13 = arith.constant 0 : index
    %17 = vector.load %arg6[%c0_12, %c0_13] : memref<128x128xbf16, #tpu.memory_space<vmem>>, vector<128x128xbf16>
    %cst_14 = arith.constant dense<0.000000e+00> : vector<8x128xf32>
    %18 = tpu.matmul %16, %17, %cst_14 {dimension_numbers = #tpu.dot_dimension_numbers<[1], [0], [0], [1], [0, 0, 1, 1], [], []>} : vector<8x128xbf16>, vector<128x128xbf16>, vector<8x128xf32> -> vector<8x128xf32>
    %c0_15 = arith.constant 0 : index
    %c0_16 = arith.constant 0 : index
    %19 = vector.load %arg7[%c0_15, %c0_16] : memref<1x128xf32, #tpu.memory_space<vmem>>, vector<1x128xf32>
    %20 = vector.broadcast %19 : vector<1x128xf32> to vector<8x128xf32>
    %21 = arith.addf %18, %20 : vector<8x128xf32>
    %cst_17 = arith.constant 0.000000e+00 : f32
    %22 = vector.broadcast %cst_17 : f32 to vector<8x128xf32>
    %23 = arith.maximumf %21, %22 : vector<8x128xf32>
    %24 = arith.truncf %23 : vector<8x128xf32> to vector<8x128xbf16>
    %c0_18 = arith.constant 0 : index
    %c0_19 = arith.constant 0 : index
    %25 = vector.load %arg8[%c0_18, %c0_19] : memref<128x4xbf16, #tpu.memory_space<vmem>>, vector<128x4xbf16>
    %cst_20 = arith.constant dense<0.000000e+00> : vector<8x4xf32>
    %26 = tpu.matmul %24, %25, %cst_20 {dimension_numbers = #tpu.dot_dimension_numbers<[1], [0], [0], [1], [0, 0, 1, 1], [], []>} : vector<8x128xbf16>, vector<128x4xbf16>, vector<8x4xf32> -> vector<8x4xf32>
    %c0_21 = arith.constant 0 : index
    %c0_22 = arith.constant 0 : index
    %27 = vector.load %arg9[%c0_21, %c0_22] : memref<1x4xf32, #tpu.memory_space<vmem>>, vector<1x4xf32>
    %28 = vector.broadcast %27 : vector<1x4xf32> to vector<8x4xf32>
    %29 = arith.addf %26, %28 : vector<8x4xf32>
    %30 = arith.truncf %29 : vector<8x4xf32> to vector<8x4xbf16>
    %c0_23 = arith.constant 0 : index
    %c0_24 = arith.constant 0 : index
    %31 = vector.load %arg10[%c0_23, %c0_24] : memref<8x4xbf16, #tpu.memory_space<vmem>>, vector<8x4xbf16>
    tpu.vector_store %arg10[%c0_23, %c0_24], %30 {strides = array<i32>} : memref<8x4xbf16, #tpu.memory_space<vmem>>, vector<8x4xbf16>,
    return
  }
  func.func @transform_0(%arg0: i32) -> (i32, i32) {
    %c0_i32 = arith.constant 0 : i32
    %c0_i32_0 = arith.constant 0 : i32
    return %arg0, %c0_i32 : i32, i32
  }
  func.func @transform_1(%arg0: i32) -> (i32, i32) {
    %c0_i32 = arith.constant 0 : i32
    %c0_i32_0 = arith.constant 0 : i32
    %c0_i32_1 = arith.constant 0 : i32
    return %c0_i32, %c0_i32_0 : i32, i32
  }
  func.func @transform_2(%arg0: i32) -> (i32, i32) {
    %c0_i32 = arith.constant 0 : i32
    %c0_i32_0 = arith.constant 0 : i32
    %c0_i32_1 = arith.constant 0 : i32
    return %c0_i32, %c0_i32_0 : i32, i32
  }
  func.func @transform_3(%arg0: i32) -> (i32, i32) {
    %c0_i32 = arith.constant 0 : i32
    %c0_i32_0 = arith.constant 0 : i32
    %c0_i32_1 = arith.constant 0 : i32
    return %c0_i32, %c0_i32_0 : i32, i32
  }
  func.func @transform_4(%arg0: i32) -> (i32, i32) {
    %c0_i32 = arith.constant 0 : i32
    %c0_i32_0 = arith.constant 0 : i32
    %c0_i32_1 = arith.constant 0 : i32
    return %c0_i32, %c0_i32_0 : i32, i32
  }
  func.func @transform_5(%arg0: i32) -> (i32, i32) {
    %c0_i32 = arith.constant 0 : i32
    %c0_i32_0 = arith.constant 0 : i32
    %c0_i32_1 = arith.constant 0 : i32
    return %c0_i32, %c0_i32_0 : i32, i32
  }
  func.func @transform_6(%arg0: i32) -> (i32, i32) {
    %c0_i32 = arith.constant 0 : i32
    %c0_i32_0 = arith.constant 0 : i32
    %c0_i32_1 = arith.constant 0 : i32
    return %c0_i32, %c0_i32_0 : i32, i32
  }
  func.func @transform_7(%arg0: i32) -> (i32, i32) {
    %c0_i32 = arith.constant 0 : i32
    %c0_i32_0 = arith.constant 0 : i32
    %c0_i32_1 = arith.constant 0 : i32
    return %c0_i32, %c0_i32_0 : i32, i32
  }
  func.func @transform_8(%arg0: i32) -> (i32, i32) {
    %c0_i32 = arith.constant 0 : i32
    %c0_i32_0 = arith.constant 0 : i32
    %c0_i32_1 = arith.constant 0 : i32
    return %c0_i32, %c0_i32_0 : i32, i32
  }
  func.func @transform_9(%arg0: i32) -> (i32, i32) {
    %c0_i32 = arith.constant 0 : i32
    %c0_i32_0 = arith.constant 0 : i32
    return %arg0, %c0_i32 : i32, i32
  }
}

</mosaic_0001>

<bundles_post_ra>
// kernel: qnetwork_large_forward.1
= control target key start
LH: loop header
LB: loop body
LE: loop exit
PB: predicated region body
PF: predicated region fallthrough
CT: control target
= control target key end

     0   :  { %vm56_vm0 = vcmask 1043456   ;;  %v672_v1 = vmov 0   ;;  %vm52_vm1 = vcmask 64512   ;;  %v673_v22 = vmov 0.0   ;;  %s860_s1 = inlined_call_operand.vmem [shape: bf16[8,256], index: 1, kind: input, shape index: {}]   ;;  %s861_s0 = inlined_call_operand.vmem [shape: bf16[8,8], index: 0, kind: input, shape index: {}]   ;;  %s862_s3 = inlined_call_operand.vmem [shape: bf16[256,128], index: 3, kind: input, shape index: {}]   ;;  %s863_s5 = inlined_call_operand.vmem [shape: bf16[128,128], index: 5, kind: input, shape index: {}]   ;;  %s864_s2 = inlined_call_operand.vmem [shape: f32[1,256], index: 2, kind: input, shape index: {}]   ;;  %s865_s7 = inlined_call_operand.vmem [shape: bf16[128,4], index: 7, kind: input, shape index: {}]   ;;  %s866_s4 = inlined_call_operand.vmem [shape: f32[1,128], index: 4, kind: input, shape index: {}]   ;;  %s867_s6 = inlined_call_operand.vmem [shape: f32[1,128], index: 6, kind: input, shape index: {}]   ;;  %s868_s8 = inlined_call_operand.vmem [shape: f32[1,4], index: 8, kind: input, shape index: {}]   ;;  %s869_s9 = inlined_call_operand.vmem [shape: bf16[8,4], index: 9, kind: output, shape index: {}]  }
   0x1   :  { %v34_v0 = vld [vmem:[%s860_s1] sm:$0xff]  ;;  %95 = vmatprep.mubr.bf16.mxu0 %v672_v1  ;;  %v642_v8 = vld [vmem:[%s862_s3 + $0x48] sm:$0xff]   ;;  %v644_v10 = vld [vmem:[%s862_s3 + $0x50] sm:$0xff]   ;;  %v37_v29 = vlaneseq  ;;  %vm674_vm2 = vmmov 0   ;;  %vm510_vm3 = vcmask 27648  }
   0x2   :  { %v517_v2 = vcombine.high %v34_v0, %v34_v0  ;;  %v516_v3 = vcombine.low %v34_v0, %v34_v0  ;;  %v640_v4 = vld [vmem:[%s862_s3 + $0x40] sm:$0xff]   ;;  %v643_v9 = vld [vmem:[%s862_s3 + $0x8] sm:$0xff]   ;;  %v645_v11 = vld [vmem:[%s862_s3 + $0x10] sm:$0xff]  }
   0x3   :  { %v33_v5 = vld [vmem:[%s861_s0] sm:$0xf]  ;;  %555 = vmatprep.subr.bf16.mxu1 %v640_v4  ;;  %v646_v12 = vld [vmem:[%s862_s3 + $0x58] sm:$0xff]   ;;  %v650_v16 = vld [vmem:[%s862_s3 + $0x68] sm:$0xff]   ;;  %v38_v30 = vshrl.u32 %v37_v29, 7 }
   0x4   :  { %v641_v6 = vld [vmem:[%s862_s3] sm:$0xff]   ;;  %518 = vmatprep.subr.msk.bf16.mxu0 %vm56_vm0, %v517_v2  ;;  %v58_v7 = vsel %vm56_vm0, %v516_v3, 0  ;;  %v647_v13 = vld [vmem:[%s862_s3 + $0x18] sm:$0xff]   ;;  %v651_v17 = vld [vmem:[%s862_s3 + $0x28] sm:$0xff]  }
   0x5   :  { %64 = vmatpush1.bf16.msra.mxu0 %v58_v7  ;;  %556 = vmatpush3.bf16.msra.mxu1 %v641_v6  ;;  %v648_v14 = vld [vmem:[%s862_s3 + $0x60] sm:$0xff]   ;;  %v652_v18 = vld [vmem:[%s862_s3 + $0x70] sm:$0xff]   ;;  %v654_v20 = vld [vmem:[%s862_s3 + $0x78] sm:$0xff]   ;;  %v39_v31 = vsub.s32 0, %v38_v30  ;;  %v43_v33 = vsub.s32 1, %v38_v30 }
   0x6   :  { %557 = vmatprep.subr.bf16.mxu1 %v642_v8  ;;  %v649_v15 = vld [vmem:[%s862_s3 + $0x20] sm:$0xff]   ;;  %v653_v19 = vld [vmem:[%s862_s3 + $0x30] sm:$0xff]   ;;  %v655_v21 = vld [vmem:[%s862_s3 + $0x38] sm:$0xff]   ;;  %595 = vmatprep.subr.bf16.mxu0 %v673_v22 }
   0x7   :  { %v656_v23 = vld [vmem:[%s863_s5] sm:$0xff]   ;;  %v657_v24 = vld [vmem:[%s863_s5 + $0x8] sm:$0xff]   ;;  %v658_v25 = vld [vmem:[%s863_s5 + $0x10] sm:$0xff]  }
   0x8   :  { %519 = vmatmul.mubr.msk.bf16.vlgmr.msra.gmra.mrb[0].mxu0 %vm52_vm1, %v33_v5  ;;  %v659_v26 = vld [vmem:[%s863_s5 + $0x18] sm:$0xff]   ;;  %v660_v27 = vld [vmem:[%s863_s5 + $0x20] sm:$0xff]   ;;  %v661_v28 = vld [vmem:[%s863_s5 + $0x28] sm:$0xff]  }
   0x9   :  { %558 = vmatpush3.bf16.msra.mxu1 %v643_v9  ;;  %596 = vmatpush3.bf16.msra.mxu0 %v656_v23  ;;  %v35_v32 = vld [vmem:[%s864_s2] sm:$0x3]  ;;  %v662_v46 = vld [vmem:[%s863_s5 + $0x30] sm:$0xff]   ;;  %v663_v47 = vld [vmem:[%s863_s5 + $0x38] sm:$0xff]  }
   0xa   :  { %559 = vmatprep.subr.bf16.mxu1 %v644_v10  ;;  %597 = vmatprep.subr.bf16.mxu0 %v673_v22  ;;  %v40_v34 = vrot.slane %v35_v32, %v39_v31  ;;  %v44_v35 = vrot.slane %v35_v32, %v43_v33  ;;  %v664_v48 = vld [vmem:[%s865_s7] sm:$0xff]   ;;  %v665_v49 = vld [vmem:[%s865_s7 + $0x8] sm:$0xff]   ;;  %v666_v50 = vld [vmem:[%s865_s7 + $0x10] sm:$0xff]  }
   0xb   :  { %611 = vmatprep.mubr.msk.bf16.mxu0 %vm674_vm2, %v673_v22  ;;  %v667_v51 = vld [vmem:[%s865_s7 + $0x18] sm:$0xff]   ;;  %v668_v52 = vld [vmem:[%s865_s7 + $0x20] sm:$0xff]   ;;  %v669_v53 = vld [vmem:[%s865_s7 + $0x28] sm:$0xff]  }
   0xc   :  { %v520_v55 = vld [vmem:[%s866_s4] ss:$0 sm:$0xff]  ;;  %v670_v63 = vld [vmem:[%s865_s7 + $0x30] sm:$0xff]   ;;  %v671_v0 = vld [vmem:[%s865_s7 + $0x38] sm:$0xff]  }
   0xd   :  { %560 = vmatpush3.bf16.msra.mxu1 %v645_v11  ;;  %598 = vmatpush3.bf16.msra.mxu0 %v657_v24  ;;  %v537_v1 = vld [vmem:[%s867_s6] ss:$0 sm:$0xff] }
   0xe   :  { %561 = vmatprep.subr.bf16.mxu1 %v646_v12  ;;  %599 = vmatprep.subr.bf16.mxu0 %v673_v22  ;;  %v546_v9 = vld [vmem:[%s868_s8] ss:$0 sm:$0xff] }
  0x11   :  { %562 = vmatpush3.bf16.msra.mxu1 %v647_v13  ;;  %600 = vmatpush3.bf16.msra.mxu0 %v658_v25 }
  0x12   :  { %563 = vmatprep.subr.bf16.mxu1 %v648_v14  ;;  %601 = vmatprep.subr.bf16.mxu0 %v673_v22 }
  0x15   :  { %564 = vmatpush3.bf16.msra.mxu1 %v649_v15  ;;  %602 = vmatpush3.bf16.msra.mxu0 %v659_v26 }
  0x16   :  { %565 = vmatprep.subr.bf16.mxu1 %v650_v16  ;;  %603 = vmatprep.subr.bf16.mxu0 %v673_v22 }
  0x19   :  { %566 = vmatpush3.bf16.msra.mxu1 %v651_v17  ;;  %604 = vmatpush3.bf16.msra.mxu0 %v660_v27 }
  0x1a   :  { %567 = vmatprep.subr.bf16.mxu1 %v652_v18  ;;  %605 = vmatprep.subr.bf16.mxu0 %v673_v22 }
  0x1d   :  { %568 = vmatpush3.bf16.msra.mxu1 %v653_v19  ;;  %606 = vmatpush3.bf16.msra.mxu0 %v661_v28 }
  0x1e   :  { %569 = vmatprep.subr.bf16.mxu1 %v654_v20  ;;  %607 = vmatprep.subr.bf16.mxu0 %v673_v22 }
  0x21   :  { %570 = vmatpush3.bf16.msra.mxu1 %v655_v21  ;;  %608 = vmatpush3.bf16.msra.mxu0 %v662_v46 }
  0x22   :  { %615 = vmatprep.subr.bf16.mxu1 %v673_v22  ;;  %609 = vmatprep.subr.bf16.mxu0 %v673_v22 }
  0x25   :  { %610 = vmatpush3.bf16.msra.mxu0 %v663_v47 }
  0xdb   :  { %v97_v36 = vpop.f32.mrb[0].mxu0 }
  0xdc   :  { %v98_v37 = vadd.f32 %v97_v36, %v40_v34  ;;  %v99_v38 = vpop.f32.mrb[1].mxu0 }
  0xdd   :  { %v100_v39 = vadd.f32 %v99_v38, %v44_v35  ;;  %v101_v40 = vpop.f32.mrb[2].mxu0 }
  0xde   :  { %v104_v41 = vmax.f32 %v98_v37, 0.0  ;;  %v102_v42 = vpop.f32.mrb[3].mxu0 }
  0xdf   :  { %v105_v43 = vmax.f32 %v100_v39, 0.0 }
  0xe0   :  { %v106_v45 = vpack.c.bf16 %v104_v41, %v104_v41 }
  0xe1   :  { %v107_v44 = vpack.c.bf16 %v105_v43, %v105_v43 }
  0xe3   :  { %275 = vmatprep.mubr.bf16.mxu1 %v107_v44 }
  0xe4   :  { %276 = vmatmul.mubr.bf16.vlgmr.msra.gmra.mrb[0].mxu1 %v106_v45 }
  0xe5   :  { %631 = vmatprep.mubr.msk.bf16.mxu1 %vm674_vm2, %v673_v22  ;;  %616 = vmatpush3.bf16.msra.mxu1 %v664_v48 }
  0xe6   :  { %617 = vmatprep.subr.bf16.mxu1 %v673_v22 }
  0xe9   :  { %618 = vmatpush3.bf16.msra.mxu1 %v665_v49 }
  0xea   :  { %619 = vmatprep.subr.bf16.mxu1 %v673_v22 }
  0xed   :  { %620 = vmatpush3.bf16.msra.mxu1 %v666_v50 }
  0xee   :  { %621 = vmatprep.subr.bf16.mxu1 %v673_v22 }
  0xf1   :  { %622 = vmatpush3.bf16.msra.mxu1 %v667_v51 }
  0xf2   :  { %623 = vmatprep.subr.bf16.mxu1 %v673_v22 }
  0xf5   :  { %624 = vmatpush3.bf16.msra.mxu1 %v668_v52 }
  0xf6   :  { %625 = vmatprep.subr.bf16.mxu1 %v673_v22 }
  0xf9   :  { %626 = vmatpush3.bf16.msra.mxu1 %v669_v53 }
  0xfa   :  { %627 = vmatprep.subr.bf16.mxu1 %v673_v22 }
  0xfd   :  { %628 = vmatpush3.bf16.msra.mxu1 %v670_v63 }
  0xfe   :  { %629 = vmatprep.subr.bf16.mxu1 %v673_v22 }
 0x101   :  { %630 = vmatpush3.bf16.msra.mxu1 %v671_v0 }
 0x1b7   :  { %v571_v54 = vpop.f32.mrb[0].mxu1 }
 0x1b8   :  { %v572_v56 = vpop.f32.mrb[1].mxu1 }
 0x1b9   :  { %v573_v57 = vadd.f32 %v572_v56, %v571_v54  ;;  %v574_v58 = vpop.f32.mrb[2].mxu1 }
 0x1ba   :  { %v575_v59 = vpop.f32.mrb[3].mxu1 }
 0x1bb   :  { %v278_v60 = vadd.f32 %v573_v57, %v520_v55 }
 0x1bd   :  { %v283_v61 = vmax.f32 %v278_v60, 0.0 }
 0x1bf   :  { %v284_v62 = vpack.c.bf16 %v283_v61, %v283_v61 }
 0x1c1   :  { %612 = vmatmul.mubr.bf16.vlgmr.msra.gmra.mrb[4].mxu0 %v284_v62 }
 0x294   :  { %v390_v2 = vpop.f32.mrb[4].mxu0 }
 0x295   :  { %v391_v3 = vadd.f32 %v537_v1, %v390_v2  ;;  %v613_v4 = vpop.f32.mrb[5].mxu0 }
 0x296   :  { %v393_v5 = vpop.f32.mrb[6].mxu0 }
 0x297   :  { %v396_v6 = vmax.f32 %v391_v3, 0.0  ;;  %v614_v7 = vpop.f32.mrb[7].mxu0 }
 0x299   :  { %v397_v8 = vpack.c.bf16 %v396_v6, %v396_v6 }
 0x29b   :  { %632 = vmatmul.mubr.bf16.vlgmr.msra.gmra.mrb[4].mxu1 %v397_v8 }
 0x36e   :  { %v503_v10 = vpop.f32.mrb[4].mxu1 }
 0x36f   :  { %v504_v11 = vadd.f32 %v546_v9, %v503_v10  ;;  %v633_v12 = vpop.f32.mrb[5].mxu1 }
 0x370   :  { %v506_v13 = vpop.f32.mrb[6].mxu1 }
 0x371   :  { %v509_v14 = vpack.c.bf16 %v504_v11, %v504_v11  ;;  %v634_v15 = vpop.f32.mrb[7].mxu1 }
 0x373   :  { %511 = vst.msk [vmem:[%s869_s9] sm:$0xf] %vm510_vm3, %v509_v14 }

</bundles_post_ra>
